<compile_context>
chip_gen: v7x
topology: tpu7x:2x2x1
jax: 0.10.0
libtpu: 0.0.40
codegen_flags: <defaults>
</compile_context>

<pallas_src>
import functools

import jax
import jax.numpy as jnp
from jax.experimental import pallas as pl
from jax.experimental.pallas import tpu as pltpu

FEAT_PAD = 128   # padded hidden-feature width (lane dim)
IN_PAD = 8       # padded input width  (n_input=2 -> 8, incl. constant-1 bias column)
OUT_PAD = 8      # padded output width (n_output=1 -> 8)
TB_MAX = 4096    # max batch tile (sublane dim, multiple of 8)

N_INPUT = 2
N_OUTPUT = 1
N_HIDDENS = [32, 64, 128, 64, 32]


def _round_up(n, m):
    return (n + m - 1) // m * m


def _cdiv(a, b):
    return (a + b - 1) // b


def _tpu_kind():
    try:
        return jax.devices()[0].device_kind.lower()
    except Exception:
        return ""


def _device_num_tc():
    """TensorCores per chip: 2 on v7x, 1 otherwise."""
    return 2 if "v7" in _tpu_kind() else 1


def _default_act_dtype():
    """bf16 elementwise chain only where the VPU/EUP support bf16 (v6e/v7x)."""
    kind = _tpu_kind()
    return jnp.bfloat16 if ("v6" in kind or "v7" in kind) else jnp.float32


def _choose_batch_tile(batch, tb_max=TB_MAX, num_cores=1):
    """Largest batch tile that fits; on v7x keep an (even) multi-step grid so
    both TensorCores get equal work via dimension_semantics=("parallel",)."""
    b8 = _round_up(batch, 8)
    tb = min(tb_max, b8)
    if num_cores >= 2 and b8 >= 16:
        steps = _cdiv(b8, tb)
        if steps % 2 == 1:
            steps += 1
        tb = _round_up(_cdiv(b8, steps), 8)
    return tb


def _mlp_kernel(x_ref, w0_ref, w_ref, wl_ref, b_ref, bl_ref, o_ref, *, act_dtype):
    """One batch tile of the whole MLP.

    x_ref:  (TB, IN_PAD)                f32 padded input; column n_in is the constant 1
    w0_ref: (IN_PAD, FEAT_PAD)          first-layer weight with bias folded in (compute dtype)
    w_ref:  (n_mid, FEAT_PAD, FEAT_PAD) hidden-to-hidden weights (compute dtype)
    wl_ref: (FEAT_PAD, OUT_PAD)         output-layer weight (compute dtype)
    b_ref:  (n_mid, 1, FEAT_PAD)        hidden-layer biases, f32
    bl_ref: (1, OUT_PAD)                output-layer bias, f32
    o_ref:  (TB, OUT_PAD)               f32 output (first N_OUTPUT cols valid)
    """
    n_mid = w_ref.shape[0]
    cd = w0_ref.dtype  # MXU operand dtype (bf16 or f32); accumulation is always f32

    # Layer 0 (input layer): bias is folded into w0 via the constant-1 column.
    h = jnp.dot(x_ref[...].astype(cd), w0_ref[...],
                preferred_element_type=jnp.float32)
    # Hidden-to-hidden layers.
    for l in range(n_mid):
        h = jnp.tanh(h.astype(act_dtype))          # bf16 on v6e/v7x, f32 on v5e
        h = jnp.dot(h.astype(cd), w_ref[l],
                    preferred_element_type=jnp.float32) + b_ref[l]
    # Output layer: narrow (FEAT_PAD -> OUT_PAD) dot written straight to o_ref.
    h = jnp.tanh(h.astype(act_dtype))
    out = jnp.dot(h.astype(cd), wl_ref[...],
                  preferred_element_type=jnp.float32) + bl_ref[...]
    o_ref[...] = out.astype(o_ref.dtype)


def prepare_params(weights, biases, compute_dtype=jnp.bfloat16):
    """Pad + stack parameters once (call outside the training/forward loop).

    weights: list of (in_dim, out_dim) arrays (== torch weight.T)
    biases:  list of (out_dim,) arrays
    Returns (w0, w_rest, w_last, b_stack, b_last).
    """
    n_layers = len(weights)
    assert n_layers >= 3
    n_in, h0 = weights[0].shape
    assert n_in < IN_PAD            # need a spare column for the folded bias
    assert weights[-1].shape[1] <= OUT_PAD
    for w in weights[:-1]:
        assert w.shape[0] <= FEAT_PAD and w.shape[1] <= FEAT_PAD

    # First layer: weight + bias folded into row n_in (x carries a constant 1 there).
    w0 = jnp.zeros((IN_PAD, FEAT_PAD), jnp.float32)
    w0 = w0.at[:n_in, :h0].set(jnp.asarray(weights[0], jnp.float32))
    w0 = w0.at[n_in, :h0].set(jnp.asarray(biases[0], jnp.float32))
    w0 = w0.astype(compute_dtype)

    # Hidden-to-hidden layers 1 .. n_layers-2.
    n_mid = n_layers - 2
    w_rest = jnp.zeros((n_mid, FEAT_PAD, FEAT_PAD), jnp.float32)
    b_stack = jnp.zeros((n_mid, 1, FEAT_PAD), jnp.float32)
    for l in range(1, n_layers - 1):
        di, do = weights[l].shape
        w_rest = w_rest.at[l - 1, :di, :do].set(jnp.asarray(weights[l], jnp.float32))
        b_stack = b_stack.at[l - 1, 0, :do].set(jnp.asarray(biases[l], jnp.float32))
    w_rest = w_rest.astype(compute_dtype)

    # Output layer (kept narrow: FEAT_PAD x OUT_PAD).
    di, do = weights[-1].shape
    w_last = jnp.zeros((FEAT_PAD, OUT_PAD), jnp.float32)
    w_last = w_last.at[:di, :do].set(jnp.asarray(weights[-1], jnp.float32))
    w_last = w_last.astype(compute_dtype)
    b_last = jnp.zeros((1, OUT_PAD), jnp.float32)
    b_last = b_last.at[0, :do].set(jnp.asarray(biases[-1], jnp.float32))

    return w0, w_rest, w_last, b_stack, b_last


def pinn_nn_forward(x, w0, w_rest, w_last, b_stack, b_last,
                    n_out=N_OUTPUT, act_dtype=None):
    """Forward pass of the PINN MLP via a single Pallas kernel.

    x: (B, n_input) float32
    returns: (B, n_out) float32
    """
    B, n_in = x.shape
    assert n_in < IN_PAD
    n_mid = w_rest.shape[0]
    n_layers = n_mid + 2

    if act_dtype is None:
        # Keep the elementwise chain f32 when the f32 parameter path is used
        # (exactness check); otherwise pick per-chip (bf16 on v6e/v7x).
        act_dtype = jnp.float32 if w0.dtype == jnp.float32 else _default_act_dtype()

    tb = _choose_batch_tile(B, num_cores=_device_num_tc())
    b_pad = _round_up(B, tb)

    x_pad = jnp.zeros((b_pad, IN_PAD), jnp.float32)
    x_pad = x_pad.at[:B, :n_in].set(x.astype(jnp.float32))
    x_pad = x_pad.at[:, n_in].set(1.0)   # constant-1 column -> folded first-layer bias

    flops = int(2 * b_pad * (IN_PAD * FEAT_PAD
                             + n_mid * FEAT_PAD * FEAT_PAD
                             + FEAT_PAD * OUT_PAD))
    transcendentals = int((n_layers - 1) * b_pad * FEAT_PAD)
    bytes_accessed = int(
        b_pad * (IN_PAD + OUT_PAD) * 4
        + w0.size * w0.dtype.itemsize
        + w_rest.size * w_rest.dtype.itemsize
        + w_last.size * w_last.dtype.itemsize
        + b_stack.size * 4 + b_last.size * 4)

    kernel = functools.partial(_mlp_kernel, act_dtype=act_dtype)

    out_pad = pl.pallas_call(
        kernel,
        out_shape=jax.ShapeDtypeStruct((b_pad, OUT_PAD), jnp.float32),
        grid_spec=pltpu.PrefetchScalarGridSpec(
            num_scalar_prefetch=0,
            grid=(b_pad // tb,),
            in_specs=[
                pl.BlockSpec((tb, IN_PAD), lambda i: (i, 0)),
                # Constant index_maps: weights/biases DMA'd into VMEM once.
                pl.BlockSpec((IN_PAD, FEAT_PAD), lambda i: (0, 0)),
                pl.BlockSpec((n_mid, FEAT_PAD, FEAT_PAD), lambda i: (0, 0, 0)),
                pl.BlockSpec((FEAT_PAD, OUT_PAD), lambda i: (0, 0)),
                pl.BlockSpec((n_mid, 1, FEAT_PAD), lambda i: (0, 0, 0)),
                pl.BlockSpec((1, OUT_PAD), lambda i: (0, 0)),
            ],
            out_specs=pl.BlockSpec((tb, OUT_PAD), lambda i: (i, 0)),
        ),
        compiler_params=pltpu.CompilerParams(
            dimension_semantics=("parallel",)),
        cost_estimate=pl.CostEstimate(
            flops=flops,
            transcendentals=transcendentals,
            bytes_accessed=bytes_accessed),
    )(x_pad, w0, w_rest, w_last, b_stack, b_last)

    return out_pad[:B, :n_out]


def _init_params(key, n_input, n_output, n_hiddens):
    """Deterministic init mimicking torch.nn.Linear default (uniform +/- 1/sqrt(fan_in))."""
    dims = [n_input] + list(n_hiddens) + [n_output]
    weights, biases = [], []
    for i in range(len(dims) - 1):
        fan_in, fan_out = dims[i], dims[i + 1]
        key, kw, kb = jax.random.split(key, 3)
        bound = 1.0 / jnp.sqrt(jnp.float32(fan_in))
        # stored as (in_dim, out_dim) == torch weight.T
        w = jax.random.uniform(kw, (fan_in, fan_out), jnp.float32, -bound, bound)
        b = jax.random.uniform(kb, (fan_out,), jnp.float32, -bound, bound)
        weights.append(w)
        biases.append(b)
    return weights, biases


def _reference_forward(x, weights, biases):
    h = x.astype(jnp.float32)
    n = len(weights)
    for l in range(n):
        h = h @ weights[l] + biases[l]
        if l < n - 1:
            h = jnp.tanh(h)
    return h


if __name__ == "__main__":
    key = jax.random.PRNGKey(0)
    key, kx = jax.random.split(key)

    batch = 8
    x = jax.random.normal(kx, (batch, N_INPUT), jnp.float32)
    weights, biases = _init_params(key, N_INPUT, N_OUTPUT, N_HIDDENS)
    ref = _reference_forward(x, weights, biases)

    # ---- f32 compute path (f32 weights + f32 activation chain): matches reference.
    pf32 = prepare_params(weights, biases, compute_dtype=jnp.float32)
    out_f32 = jax.block_until_ready(pinn_nn_forward(x, *pf32))
    assert out_f32.shape == (batch, N_OUTPUT), out_f32.shape
    assert jnp.allclose(out_f32, ref, atol=1e-5, rtol=1e-5), (out_f32, ref)

    # ---- bf16 weights, f32 activation chain (the v5e configuration).
    pbf = prepare_params(weights, biases)  # bf16 weights
    out_bf = jax.block_until_ready(
        pinn_nn_forward(x, *pbf, act_dtype=jnp.float32))
    assert out_bf.shape == (batch, N_OUTPUT), out_bf.shape
    assert jnp.allclose(out_bf, ref, atol=5e-2, rtol=5e-2), (out_bf, ref)

    # ---- default path: bf16 weights, per-chip activation dtype
    #      (bf16 tanh chain on v6e/v7x, f32 on v5e). Slightly looser tolerance
    #      since bf16 activations add ~1e-2 relative error.
    out_auto = jax.block_until_ready(pinn_nn_forward(x, *pbf))
    assert out_auto.shape == (batch, N_OUTPUT), out_auto.shape
    assert jnp.allclose(out_auto, ref, atol=1e-1, rtol=1e-1), (out_auto, ref)

    # ---- larger, non-tile-aligned batch: exercises padding + (on v7x) even-step grid.
    x_big = jax.random.normal(jax.random.PRNGKey(1), (1000, N_INPUT), jnp.float32)
    out_big = jax.block_until_ready(pinn_nn_forward(x_big, *pbf))
    ref_big = _reference_forward(x_big, weights, biases)
    assert out_big.shape == (1000, N_OUTPUT), out_big.shape
    assert jnp.allclose(out_big, ref_big, atol=1e-1, rtol=1e-1)

    print("KERNEL_OK")
</pallas_src>

<mosaic_0001>
module attributes {stable_mosaic.version = 11 : i64} {
  func.func @_mlp_kernel(%arg0: i32, %arg1: memref<8x8xf32, #tpu.memory_space<vmem>>, %arg2: memref<8x128xf32, #tpu.memory_space<vmem>>, %arg3: memref<4x128x128xf32, #tpu.memory_space<vmem>>, %arg4: memref<128x8xf32, #tpu.memory_space<vmem>>, %arg5: memref<4x1x128xf32, #tpu.memory_space<vmem>>, %arg6: memref<1x8xf32, #tpu.memory_space<vmem>>, %arg7: memref<8x8xf32, #tpu.memory_space<vmem>>) attributes {dimension_semantics = [#tpu.dimension_semantics<parallel>], iteration_bounds = array<i64: 1>, scalar_prefetch = 0 : i64, scratch_operands = 0 : i64, tpu.core_type = #tpu.core_type<tc>, window_params = [{transform_indices = @transform_0, window_bounds = array<i64: 8, 8>}, {pipeline_mode = #tpu.pipeline_mode<synchronous>, transform_indices = @transform_1, window_bounds = array<i64: 8, 128>}, {pipeline_mode = #tpu.pipeline_mode<synchronous>, transform_indices = @transform_2, window_bounds = array<i64: 4, 128, 128>}, {pipeline_mode = #tpu.pipeline_mode<synchronous>, transform_indices = @transform_3, window_bounds = array<i64: 128, 8>}, {pipeline_mode = #tpu.pipeline_mode<synchronous>, transform_indices = @transform_4, window_bounds = array<i64: 4, 1, 128>}, {pipeline_mode = #tpu.pipeline_mode<synchronous>, transform_indices = @transform_5, window_bounds = array<i64: 1, 8>}, {transform_indices = @transform_6, window_bounds = array<i64: 8, 8>}]} {
    %c0 = arith.constant 0 : index
    %c0_0 = arith.constant 0 : index
    %0 = vector.load %arg1[%c0, %c0_0] : memref<8x8xf32, #tpu.memory_space<vmem>>, vector<8x8xf32>
    %c0_1 = arith.constant 0 : index
    %c0_2 = arith.constant 0 : index
    %1 = vector.load %arg2[%c0_1, %c0_2] : memref<8x128xf32, #tpu.memory_space<vmem>>, vector<8x128xf32>
    %cst = arith.constant dense<0.000000e+00> : vector<8x128xf32>
    %2 = tpu.matmul %0, %1, %cst {dimension_numbers = #tpu.dot_dimension_numbers<[1], [0], [0], [1], [0, 0, 1, 1], [], []>} : vector<8x8xf32>, vector<8x128xf32>, vector<8x128xf32> -> vector<8x128xf32>
    %3 = math.tanh %2 : vector<8x128xf32>
    %c0_3 = arith.constant 0 : index
    %c0_4 = arith.constant 0 : index
    %c0_5 = arith.constant 0 : index
    %4 = vector.load %arg3[%c0_3, %c0_4, %c0_5] : memref<4x128x128xf32, #tpu.memory_space<vmem>>, vector<1x128x128xf32>
    %5 = vector.shape_cast %4 : vector<1x128x128xf32> to vector<128x128xf32>
    %cst_6 = arith.constant dense<0.000000e+00> : vector<8x128xf32>
    %6 = tpu.matmul %3, %5, %cst_6 {dimension_numbers = #tpu.dot_dimension_numbers<[1], [0], [0], [1], [0, 0, 1, 1], [], []>} : vector<8x128xf32>, vector<128x128xf32>, vector<8x128xf32> -> vector<8x128xf32>
    %c0_7 = arith.constant 0 : index
    %c0_8 = arith.constant 0 : index
    %c0_9 = arith.constant 0 : index
    %7 = vector.load %arg5[%c0_7, %c0_8, %c0_9] : memref<4x1x128xf32, #tpu.memory_space<vmem>>, vector<1x1x128xf32>
    %8 = vector.shape_cast %7 : vector<1x1x128xf32> to vector<1x128xf32>
    %9 = vector.broadcast %8 : vector<1x128xf32> to vector<8x128xf32>
    %10 = arith.addf %6, %9 : vector<8x128xf32>
    %11 = math.tanh %10 : vector<8x128xf32>
    %c1 = arith.constant 1 : index
    %c0_10 = arith.constant 0 : index
    %c0_11 = arith.constant 0 : index
    %12 = vector.load %arg3[%c1, %c0_10, %c0_11] : memref<4x128x128xf32, #tpu.memory_space<vmem>>, vector<1x128x128xf32>
    %13 = vector.shape_cast %12 : vector<1x128x128xf32> to vector<128x128xf32>
    %cst_12 = arith.constant dense<0.000000e+00> : vector<8x128xf32>
    %14 = tpu.matmul %11, %13, %cst_12 {dimension_numbers = #tpu.dot_dimension_numbers<[1], [0], [0], [1], [0, 0, 1, 1], [], []>} : vector<8x128xf32>, vector<128x128xf32>, vector<8x128xf32> -> vector<8x128xf32>
    %c1_13 = arith.constant 1 : index
    %c0_14 = arith.constant 0 : index
    %c0_15 = arith.constant 0 : index
    %15 = vector.load %arg5[%c1_13, %c0_14, %c0_15] : memref<4x1x128xf32, #tpu.memory_space<vmem>>, vector<1x1x128xf32>
    %16 = vector.shape_cast %15 : vector<1x1x128xf32> to vector<1x128xf32>
    %17 = vector.broadcast %16 : vector<1x128xf32> to vector<8x128xf32>
    %18 = arith.addf %14, %17 : vector<8x128xf32>
    %19 = math.tanh %18 : vector<8x128xf32>
    %c2 = arith.constant 2 : index
    %c0_16 = arith.constant 0 : index
    %c0_17 = arith.constant 0 : index
    %20 = vector.load %arg3[%c2, %c0_16, %c0_17] : memref<4x128x128xf32, #tpu.memory_space<vmem>>, vector<1x128x128xf32>
    %21 = vector.shape_cast %20 : vector<1x128x128xf32> to vector<128x128xf32>
    %cst_18 = arith.constant dense<0.000000e+00> : vector<8x128xf32>
    %22 = tpu.matmul %19, %21, %cst_18 {dimension_numbers = #tpu.dot_dimension_numbers<[1], [0], [0], [1], [0, 0, 1, 1], [], []>} : vector<8x128xf32>, vector<128x128xf32>, vector<8x128xf32> -> vector<8x128xf32>
    %c2_19 = arith.constant 2 : index
    %c0_20 = arith.constant 0 : index
    %c0_21 = arith.constant 0 : index
    %23 = vector.load %arg5[%c2_19, %c0_20, %c0_21] : memref<4x1x128xf32, #tpu.memory_space<vmem>>, vector<1x1x128xf32>
    %24 = vector.shape_cast %23 : vector<1x1x128xf32> to vector<1x128xf32>
    %25 = vector.broadcast %24 : vector<1x128xf32> to vector<8x128xf32>
    %26 = arith.addf %22, %25 : vector<8x128xf32>
    %27 = math.tanh %26 : vector<8x128xf32>
    %c3 = arith.constant 3 : index
    %c0_22 = arith.constant 0 : index
    %c0_23 = arith.constant 0 : index
    %28 = vector.load %arg3[%c3, %c0_22, %c0_23] : memref<4x128x128xf32, #tpu.memory_space<vmem>>, vector<1x128x128xf32>
    %29 = vector.shape_cast %28 : vector<1x128x128xf32> to vector<128x128xf32>
    %cst_24 = arith.constant dense<0.000000e+00> : vector<8x128xf32>
    %30 = tpu.matmul %27, %29, %cst_24 {dimension_numbers = #tpu.dot_dimension_numbers<[1], [0], [0], [1], [0, 0, 1, 1], [], []>} : vector<8x128xf32>, vector<128x128xf32>, vector<8x128xf32> -> vector<8x128xf32>
    %c3_25 = arith.constant 3 : index
    %c0_26 = arith.constant 0 : index
    %c0_27 = arith.constant 0 : index
    %31 = vector.load %arg5[%c3_25, %c0_26, %c0_27] : memref<4x1x128xf32, #tpu.memory_space<vmem>>, vector<1x1x128xf32>
    %32 = vector.shape_cast %31 : vector<1x1x128xf32> to vector<1x128xf32>
    %33 = vector.broadcast %32 : vector<1x128xf32> to vector<8x128xf32>
    %34 = arith.addf %30, %33 : vector<8x128xf32>
    %35 = math.tanh %34 : vector<8x128xf32>
    %c0_28 = arith.constant 0 : index
    %c0_29 = arith.constant 0 : index
    %36 = vector.load %arg4[%c0_28, %c0_29] : memref<128x8xf32, #tpu.memory_space<vmem>>, vector<128x8xf32>
    %cst_30 = arith.constant dense<0.000000e+00> : vector<8x8xf32>
    %37 = tpu.matmul %35, %36, %cst_30 {dimension_numbers = #tpu.dot_dimension_numbers<[1], [0], [0], [1], [0, 0, 1, 1], [], []>} : vector<8x128xf32>, vector<128x8xf32>, vector<8x8xf32> -> vector<8x8xf32>
    %c0_31 = arith.constant 0 : index
    %c0_32 = arith.constant 0 : index
    %38 = vector.load %arg6[%c0_31, %c0_32] : memref<1x8xf32, #tpu.memory_space<vmem>>, vector<1x8xf32>
    %39 = vector.broadcast %38 : vector<1x8xf32> to vector<8x8xf32>
    %40 = arith.addf %37, %39 : vector<8x8xf32>
    %c0_33 = arith.constant 0 : index
    %c0_34 = arith.constant 0 : index
    %41 = vector.load %arg7[%c0_33, %c0_34] : memref<8x8xf32, #tpu.memory_space<vmem>>, vector<8x8xf32>
    tpu.vector_store %arg7[%c0_33, %c0_34], %40 {strides = array<i32>} : memref<8x8xf32, #tpu.memory_space<vmem>>, vector<8x8xf32>,
    return
  }
  func.func @transform_0(%arg0: i32) -> (i32, i32) {
    %c0_i32 = arith.constant 0 : i32
    %c0_i32_0 = arith.constant 0 : i32
    return %arg0, %c0_i32 : i32, i32
  }
  func.func @transform_1(%arg0: i32) -> (i32, i32) {
    %c0_i32 = arith.constant 0 : i32
    %c0_i32_0 = arith.constant 0 : i32
    %c0_i32_1 = arith.constant 0 : i32
    return %c0_i32, %c0_i32_0 : i32, i32
  }
  func.func @transform_2(%arg0: i32) -> (i32, i32, i32) {
    %c0_i32 = arith.constant 0 : i32
    %c0_i32_0 = arith.constant 0 : i32
    %c0_i32_1 = arith.constant 0 : i32
    %c0_i32_2 = arith.constant 0 : i32
    return %c0_i32, %c0_i32_0, %c0_i32_1 : i32, i32, i32
  }
  func.func @transform_3(%arg0: i32) -> (i32, i32) {
    %c0_i32 = arith.constant 0 : i32
    %c0_i32_0 = arith.constant 0 : i32
    %c0_i32_1 = arith.constant 0 : i32
    return %c0_i32, %c0_i32_0 : i32, i32
  }
  func.func @transform_4(%arg0: i32) -> (i32, i32, i32) {
    %c0_i32 = arith.constant 0 : i32
    %c0_i32_0 = arith.constant 0 : i32
    %c0_i32_1 = arith.constant 0 : i32
    %c0_i32_2 = arith.constant 0 : i32
    return %c0_i32, %c0_i32_0, %c0_i32_1 : i32, i32, i32
  }
  func.func @transform_5(%arg0: i32) -> (i32, i32) {
    %c0_i32 = arith.constant 0 : i32
    %c0_i32_0 = arith.constant 0 : i32
    %c0_i32_1 = arith.constant 0 : i32
    return %c0_i32, %c0_i32_0 : i32, i32
  }
  func.func @transform_6(%arg0: i32) -> (i32, i32) {
    %c0_i32 = arith.constant 0 : i32
    %c0_i32_0 = arith.constant 0 : i32
    return %arg0, %c0_i32 : i32, i32
  }
}

</mosaic_0001>

<bundles_post_ra>
// kernel: tpu_custom_call.1
= control target key start
LH: loop header
LB: loop body
LE: loop exit
PB: predicated region body
PF: predicated region fallthrough
CT: control target
= control target key end

     0   :  { %11 = vsyncpa [#allocation3], 0  ;;  %s1257_s0 = inlined_call_operand.vmem [shape: f32[8,8], index: 0, kind: input, shape index: {}]   ;;  %s1258_s1 = inlined_call_operand.vmem [shape: f32[8,128], index: 1, kind: input, shape index: {}]   ;;  %s1259_s2 = inlined_call_operand.hbm [shape: f32[4,128,128], index: 2, kind: input, shape index: {}]   ;;  %s1260_s3 = inlined_call_operand.vmem [shape: f32[128,8], index: 3, kind: input, shape index: {}]   ;;  %s1261_s4 = inlined_call_operand.vmem [shape: f32[4,1,128], index: 4, kind: input, shape index: {}]   ;;  %s1262_s5 = inlined_call_operand.vmem [shape: f32[1,8], index: 5, kind: input, shape index: {}]   ;;  %s1263_s6 = inlined_call_operand.hbm [shape: f32[8,8], index: 6, kind: output, shape index: {}]  }
   0x1   :  { %12 = vsyncpa [#allocation4], 0  ;;  %s1067_s21 = smov [#allocation2]   ;;  %s1019_s25 = scalar_lea.hbm %s1259_s2, 8192 }
   0x2   :  { %s22_s22 = sshll.u32 %s1067_s21, 4  ;;  %p1020_p0 = scmp.ne.s32.totalorder %s1259_s2, %s1019_s25  ;;  %s23_s22 = int_to_ptr.vmem [resolvable:$true] %s22_s22 }
   0x3   :  { %p1023_p1 = scmp.lt.u32.totalorder %s1019_s25, %s1259_s2 }
   0x5   :  { %p1025_p2 = pnand %p1023_p1, %p1020_p0 }
   0x7   :  { %1028 = shalt.err (!%p1025_p2)
}
   0x8   :  { %s1029_s30 = scalar_lea.vmem %s23_s22, 8192  ;;  %p1034_p4 = scmp.lt.s32.totalorder %s23_s22, %s23_s22 }
   0x9   :  { %p1030_p3 = scmp.ne.s32.totalorder %s23_s22, %s1029_s30  ;;  %p1035_p5 = scmp.lt.s32.totalorder %s1029_s30, %s1029_s30 }
   0xb   :  { %p1036_p6 = por %p1035_p5, %p1034_p4 }
   0xd   :  { %p1037_p7 = pnand %p1036_p6, %p1030_p3 }
   0xf   :  { %1040 = shalt.err (!%p1037_p7)
}
  0x10   :  { %s1068_s7 = smov 128   ;;  %s1069_s8 = smov 8  }
  0x11   :  { %28 = dma.hbm_to_vmem [thread:$0]  %s1259_s2, 8192, %s23_s22, [#allocation3], %s1068_s7, %s1068_s7, %s1069_s8  }
  0x12   :  { %1063 = dma.done.wait [#allocation3], 8192  }
  0x13   :  { %1064 = vsyncadd [#allocation3], 4294959104  ;;  %v1070_v0 = vmov 0.0   ;;  %vm1071_vm0 = vmmov 0   ;;  %v1072_v1 = vmov 0.0|0.0   ;;  %vm40_vm1 = vcmask 64512  }
  0x14   :  { %702 = vmatprep.subr.mxu0 %v1070_v0  ;;  %704 = vmatprep.mubr.msk.f32.mxu0 %vm1071_vm0, %v1070_v0  ;;  %v39_v2 = vld [vmem:[%s1258_s1] sm:$0xff]  ;;  %v116_v5 = vld [vmem:[#allocation2 + $0x8] sm:$0xff]  ;;  %v117_v6 = vld [vmem:[#allocation2 + $0x10] sm:$0xff] }
  0x15   :  { %882 = vmatprep.subr.bf16.mxu1 %v1072_v1  ;;  %739 = vmatprep.mubr.msk.f32.mxu1 %vm1071_vm0, %v1070_v0  ;;  %v38_v3 = vld [vmem:[%s1257_s0] sm:$0xff]  ;;  %v118_v7 = vld [vmem:[#allocation2 + $0x18] sm:$0xff]  ;;  %v120_v11 = vld [vmem:[#allocation2 + $0x28] sm:$0xff] }
  0x16   :  { %v115_v4 = vld [vmem:[#allocation2] sm:$0xff]  ;;  %703 = vmatpush3.msra.mxu0 %v39_v2  ;;  %v886_v9 = vpack.c.bf16 %v118_v7, %v117_v6  ;;  %v121_v13 = vld [vmem:[#allocation2 + $0x30] sm:$0xff]  ;;  %v122_v14 = vld [vmem:[#allocation2 + $0x38] sm:$0xff] }
  0x17   :  { %705 = vmatmul.mubr.msk.f32.vlgmr.msra.gmra.mrb[0].mxu0 %vm40_vm1, %v38_v3  ;;  %v883_v8 = vpack.c.bf16 %v116_v5, %v115_v4  ;;  %906 = vmatprep.subr.bf16.mxu0 %v1072_v1  ;;  %v119_v10 = vld [vmem:[#allocation2 + $0x20] sm:$0xff]  ;;  %v892_v15 = vpack.c.bf16 %v122_v14, %v121_v13  ;;  %v124_v17 = vld [vmem:[#allocation2 + $0x48] sm:$0xff]  ;;  %v125_v19 = vld [vmem:[#allocation2 + $0x50] sm:$0xff] }
  0x18   :  { %774 = vmatprep.mubr.msk.f32.mxu0 %vm1071_vm0, %v1070_v0  ;;  %v889_v12 = vpack.c.bf16 %v120_v11, %v119_v10  ;;  %v123_v16 = vld [vmem:[#allocation2 + $0x40] sm:$0xff]  ;;  %v126_v20 = vld [vmem:[#allocation2 + $0x58] sm:$0xff]  ;;  %v128_v23 = vld [vmem:[#allocation2 + $0x68] sm:$0xff] }
  0x19   :  { %884 = vmatpush3.bf16.msra.mxu1 %v883_v8  ;;  %v895_v18 = vpack.c.bf16 %v124_v17, %v123_v16  ;;  %v898_v21 = vpack.c.bf16 %v126_v20, %v125_v19  ;;  %v127_v22 = vld [vmem:[#allocation2 + $0x60] sm:$0xff]  ;;  %v129_v25 = vld [vmem:[#allocation2 + $0x70] sm:$0xff]  ;;  %v130_v26 = vld [vmem:[#allocation2 + $0x78] sm:$0xff] }
  0x1a   :  { %885 = vmatprep.subr.bf16.mxu1 %v1072_v1  ;;  %v901_v24 = vpack.c.bf16 %v128_v23, %v127_v22  ;;  %v904_v27 = vpack.c.bf16 %v130_v26, %v129_v25  ;;  %v210_v28 = vld [vmem:[#allocation2 + $0x80] sm:$0xff]  ;;  %v211_v29 = vld [vmem:[#allocation2 + $0x88] sm:$0xff]  ;;  %v212_v30 = vld [vmem:[#allocation2 + $0x90] sm:$0xff] }
  0x1b   :  { %v907_v31 = vpack.c.bf16 %v211_v29, %v210_v28  ;;  %v213_v32 = vld [vmem:[#allocation2 + $0x98] sm:$0xff]  ;;  %v214_v34 = vld [vmem:[#allocation2 + $0xa0] sm:$0xff]  ;;  %v215_v35 = vld [vmem:[#allocation2 + $0xa8] sm:$0xff] }
  0x1c   :  { %v910_v33 = vpack.c.bf16 %v213_v32, %v212_v30  ;;  %v913_v36 = vpack.c.bf16 %v215_v35, %v214_v34  ;;  %v216_v37 = vld [vmem:[#allocation2 + $0xb0] sm:$0xff]  ;;  %v217_v38 = vld [vmem:[#allocation2 + $0xb8] sm:$0xff]  ;;  %v218_v40 = vld [vmem:[#allocation2 + $0xc0] sm:$0xff] }
  0x1d   :  { %887 = vmatpush3.bf16.msra.mxu1 %v886_v9  ;;  %908 = vmatpush3.bf16.msra.mxu0 %v907_v31  ;;  %v916_v39 = vpack.c.bf16 %v217_v38, %v216_v37  ;;  %v219_v41 = vld [vmem:[#allocation2 + $0xc8] sm:$0xff]  ;;  %v220_v46 = vld [vmem:[#allocation2 + $0xd0] sm:$0xff]  ;;  %v221_v47 = vld [vmem:[#allocation2 + $0xd8] sm:$0xff] }
  0x1e   :  { %888 = vmatprep.subr.bf16.mxu1 %v1072_v1  ;;  %909 = vmatprep.subr.bf16.mxu0 %v1072_v1  ;;  %v919_v42 = vpack.c.bf16 %v219_v41, %v218_v40  ;;  %v922_v48 = vpack.c.bf16 %v221_v47, %v220_v46  ;;  %v222_v49 = vld [vmem:[#allocation2 + $0xe0] sm:$0xff]  ;;  %v223_v50 = vld [vmem:[#allocation2 + $0xe8] sm:$0xff]  ;;  %v224_v52 = vld [vmem:[#allocation2 + $0xf0] sm:$0xff] }
  0x1f   :  { %v925_v51 = vpack.c.bf16 %v223_v50, %v222_v49  ;;  %v225_v53 = vld [vmem:[#allocation2 + $0xf8] sm:$0xff]  ;;  %v306_v55 = vld [vmem:[#allocation2 + $0x100] sm:$0xff]  ;;  %v307_v56 = vld [vmem:[#allocation2 + $0x108] sm:$0xff] }
  0x20   :  { %v928_v54 = vpack.c.bf16 %v225_v53, %v224_v52  ;;  %v308_v57 = vld [vmem:[#allocation2 + $0x110] sm:$0xff]  ;;  %v931_v58 = vpack.c.bf16 %v307_v56, %v306_v55  ;;  %v309_v59 = vld [vmem:[#allocation2 + $0x118] sm:$0xff]  ;;  %v310_v61 = vld [vmem:[#allocation2 + $0x120] sm:$0xff] }
  0x21   :  { %890 = vmatpush3.bf16.msra.mxu1 %v889_v12  ;;  %911 = vmatpush3.bf16.msra.mxu0 %v910_v33  ;;  %v934_v60 = vpack.c.bf16 %v309_v59, %v308_v57  ;;  %v311_v62 = vld [vmem:[#allocation2 + $0x128] sm:$0xff]  ;;  %v312_v2 = vld [vmem:[#allocation2 + $0x130] sm:$0xff]  ;;  %v313_v3 = vld [vmem:[#allocation2 + $0x138] sm:$0xff] }
  0x22   :  { %891 = vmatprep.subr.bf16.mxu1 %v1072_v1  ;;  %912 = vmatprep.subr.bf16.mxu0 %v1072_v1  ;;  %v937_v63 = vpack.c.bf16 %v311_v62, %v310_v61  ;;  %v940_v4 = vpack.c.bf16 %v313_v3, %v312_v2  ;;  %v314_v5 = vld [vmem:[#allocation2 + $0x140] sm:$0xff]  ;;  %v315_v6 = vld [vmem:[#allocation2 + $0x148] sm:$0xff]  ;;  %v316_v13 = vld [vmem:[#allocation2 + $0x150] sm:$0xff] }
  0x23   :  { %v943_v7 = vpack.c.bf16 %v315_v6, %v314_v5  ;;  %v607_v8 = vld [vmem:[%s1261_s4] ss:$0 sm:$0xff]  ;;  %v317_v14 = vld [vmem:[#allocation2 + $0x158] sm:$0xff]  ;;  %v319_v17 = vld [vmem:[#allocation2 + $0x168] sm:$0xff] }
  0x24   :  { %v318_v16 = vld [vmem:[#allocation2 + $0x160] sm:$0xff]  ;;  %v320_v19 = vld [vmem:[#allocation2 + $0x170] sm:$0xff]  ;;  %v321_v20 = vld [vmem:[#allocation2 + $0x178] sm:$0xff] }
  0x25   :  { %893 = vmatpush3.bf16.msra.mxu1 %v892_v15  ;;  %914 = vmatpush3.bf16.msra.mxu0 %v913_v36  ;;  %v946_v15 = vpack.c.bf16 %v317_v14, %v316_v13  ;;  %v402_v22 = vld [vmem:[#allocation2 + $0x180] sm:$0xff]  ;;  %v403_v23 = vld [vmem:[#allocation2 + $0x188] sm:$0xff]  ;;  %v405_v26 = vld [vmem:[#allocation2 + $0x198] sm:$0xff] }
  0x26   :  { %894 = vmatprep.subr.bf16.mxu1 %v1072_v1  ;;  %915 = vmatprep.subr.bf16.mxu0 %v1072_v1  ;;  %v955_v25 = vpack.c.bf16 %v403_v23, %v402_v22  ;;  %v406_v28 = vld [vmem:[#allocation2 + $0x1a0] sm:$0xff]  ;;  %v407_v29 = vld [vmem:[#allocation2 + $0x1a8] sm:$0xff]  ;;  %v408_v31 = vld [vmem:[#allocation2 + $0x1b0] sm:$0xff] }
  0x27   :  { %v961_v30 = vpack.c.bf16 %v407_v29, %v406_v28  ;;  %v409_v32 = vld [vmem:[#allocation2 + $0x1b8] sm:$0xff]  ;;  %v410_v34 = vld [vmem:[#allocation2 + $0x1c0] sm:$0xff]  ;;  %v411_v35 = vld [vmem:[#allocation2 + $0x1c8] sm:$0xff] }
  0x28   :  { %v964_v33 = vpack.c.bf16 %v409_v32, %v408_v31  ;;  %v967_v36 = vpack.c.bf16 %v411_v35, %v410_v34  ;;  %v609_v37 = vld [vmem:[%s1261_s4 + $0x1] ss:$0 sm:$0xff]  ;;  %v415_v46 = vld [vmem:[#allocation2 + $0x1e8] sm:$0xff]  ;;  %v417_v49 = vld [vmem:[#allocation2 + $0x1f8] sm:$0xff] }
  0x29   :  { %896 = vmatpush3.bf16.msra.mxu1 %v895_v18  ;;  %917 = vmatpush3.bf16.msra.mxu0 %v916_v39  ;;  %v949_v18 = vpack.c.bf16 %v319_v17, %v318_v16  ;;  %v499_v52 = vld [vmem:[%s1260_s3 + $0x10] sm:$0xff]  ;;  %v501_v56 = vld [vmem:[%s1260_s3 + $0x20] sm:$0xff]  ;;  %v502_v57 = vld [vmem:[%s1260_s3 + $0x28] sm:$0xff] }
  0x2a   :  { %897 = vmatprep.subr.bf16.mxu1 %v1072_v1  ;;  %918 = vmatprep.subr.bf16.mxu0 %v1072_v1  ;;  %v503_v59 = vld [vmem:[%s1260_s3 + $0x30] sm:$0xff]  ;;  %v505_v62 = vld [vmem:[%s1260_s3 + $0x40] sm:$0xff] }
  0x2b   :  { %v611_v3 = vld [vmem:[%s1261_s4 + $0x2] ss:$0 sm:$0xff]  ;;  %v511_v14 = vld [vmem:[%s1260_s3 + $0x70] sm:$0xff]  ;;  %v613_v17 = vld [vmem:[%s1261_s4 + $0x3] ss:$0 sm:$0xff] }
  0x2c   :  { %v614_v22 = vld [vmem:[%s1262_s5] ss:$0 sm:$0xff] }
  0x2d   :  { %899 = vmatpush3.bf16.msra.mxu1 %v898_v21  ;;  %920 = vmatpush3.bf16.msra.mxu0 %v919_v42  ;;  %v952_v21 = vpack.c.bf16 %v321_v20, %v320_v19  ;;  %v412_v42 = vld [vmem:[#allocation2 + $0x1d0] sm:$0xff] }
  0x2e   :  { %900 = vmatprep.subr.bf16.mxu1 %v1072_v1  ;;  %921 = vmatprep.subr.bf16.mxu0 %v1072_v1 }
  0x31   :  { %902 = vmatpush3.bf16.msra.mxu1 %v901_v24  ;;  %923 = vmatpush3.bf16.msra.mxu0 %v922_v48  ;;  %v404_v24 = vld [vmem:[#allocation2 + $0x190] sm:$0xff] }
  0x32   :  { %903 = vmatprep.subr.bf16.mxu1 %v1072_v1  ;;  %924 = vmatprep.subr.bf16.mxu0 %v1072_v1  ;;  %v416_v48 = vld [vmem:[#allocation2 + $0x1f0] sm:$0xff] }
  0x33   :  { %v976_v50 = vpack.c.bf16 %v417_v49, %v416_v48 }
  0x35   :  { %905 = vmatpush3.bf16.msra.mxu1 %v904_v27  ;;  %926 = vmatpush3.bf16.msra.mxu0 %v925_v51  ;;  %v958_v27 = vpack.c.bf16 %v405_v26, %v404_v24  ;;  %v498_v51 = vld [vmem:[%s1260_s3 + $0x8] sm:$0xff] }
  0x36   :  { %930 = vmatprep.subr.bf16.mxu1 %v1072_v1  ;;  %927 = vmatprep.subr.bf16.mxu0 %v1072_v1 }
  0x39   :  { %929 = vmatpush3.bf16.msra.mxu0 %v928_v54  ;;  %v500_v54 = vld [vmem:[%s1260_s3 + $0x18] sm:$0xff] }
  0x3a   :  { %954 = vmatprep.subr.bf16.mxu0 %v1072_v1  ;;  %v982_v55 = vpack.c.bf16 %v500_v54, %v499_v52 }
  0xea   :  { %v110_v43 = vpop.f32.mrb[0].mxu0 }
  0xeb   :  { %1009 = vtanh.f32 %v110_v43  ;;  %v706_v44 = vpop.f32.mrb[1].mxu0  ;;  %v413_v43 = vld [vmem:[#allocation2 + $0x1d8] sm:$0xff] }
  0xec   :  { %v970_v44 = vpack.c.bf16 %v413_v43, %v412_v42 }
  0xf5   :  { %v1010_v45 = vpop.eup %1009 }
  0xf6   :  { %740 = vmatmul.mubr.f32.vlgmr.msra.gmra.mrb[0].mxu1 %v1010_v45  ;;  %v414_v45 = vld [vmem:[#allocation2 + $0x1e0] sm:$0xff] }
  0xf7   :  { %809 = vmatprep.mubr.msk.f32.mxu1 %vm1071_vm0, %v1070_v0  ;;  %932 = vmatpush3.bf16.msra.mxu1 %v931_v58  ;;  %v973_v47 = vpack.c.bf16 %v415_v46, %v414_v45  ;;  %v985_v58 = vpack.c.bf16 %v502_v57, %v501_v56 }
  0xf8   :  { %933 = vmatprep.subr.bf16.mxu1 %v1072_v1 }
  0xfb   :  { %935 = vmatpush3.bf16.msra.mxu1 %v934_v60  ;;  %v504_v60 = vld [vmem:[%s1260_s3 + $0x38] sm:$0xff] }
  0xfc   :  { %936 = vmatprep.subr.bf16.mxu1 %v1072_v1  ;;  %v988_v61 = vpack.c.bf16 %v504_v60, %v503_v59 }
  0xff   :  { %938 = vmatpush3.bf16.msra.mxu1 %v937_v63  ;;  %v506_v63 = vld [vmem:[%s1260_s3 + $0x48] sm:$0xff] }
 0x100   :  { %939 = vmatprep.subr.bf16.mxu1 %v1072_v1  ;;  %v991_v2 = vpack.c.bf16 %v506_v63, %v505_v62 }
 0x103   :  { %941 = vmatpush3.bf16.msra.mxu1 %v940_v4 }
 0x104   :  { %942 = vmatprep.subr.bf16.mxu1 %v1072_v1 }
 0x107   :  { %944 = vmatpush3.bf16.msra.mxu1 %v943_v7 }
 0x108   :  { %945 = vmatprep.subr.bf16.mxu1 %v1072_v1 }
 0x10b   :  { %947 = vmatpush3.bf16.msra.mxu1 %v946_v15  ;;  %v512_v15 = vld [vmem:[%s1260_s3 + $0x78] sm:$0xff] }
 0x10c   :  { %948 = vmatprep.subr.bf16.mxu1 %v1072_v1  ;;  %v1000_v16 = vpack.c.bf16 %v512_v15, %v511_v14 }
 0x10f   :  { %950 = vmatpush3.bf16.msra.mxu1 %v949_v18 }
 0x110   :  { %951 = vmatprep.subr.bf16.mxu1 %v1072_v1 }
 0x113   :  { %953 = vmatpush3.bf16.msra.mxu1 %v952_v21 }
 0x114   :  { %978 = vmatprep.subr.bf16.mxu1 %v1072_v1 }
 0x1c9   :  { %v204_v9 = vpop.f32.mrb[0].mxu1 }
 0x1ca   :  { %v205_v10 = vadd.f32 %v607_v8, %v204_v9  ;;  %v741_v11 = vpop.f32.mrb[1].mxu1  ;;  %v507_v8 = vld [vmem:[%s1260_s3 + $0x50] sm:$0xff]  ;;  %v508_v9 = vld [vmem:[%s1260_s3 + $0x58] sm:$0xff] }
 0x1cb   :  { %v509_v11 = vld [vmem:[%s1260_s3 + $0x60] sm:$0xff] }
 0x1cc   :  { %1011 = vtanh.f32 %v205_v10  ;;  %v994_v10 = vpack.c.bf16 %v508_v9, %v507_v8 }
 0x1d6   :  { %v1012_v12 = vpop.eup %1011 }
 0x1d7   :  { %775 = vmatmul.mubr.f32.vlgmr.msra.gmra.mrb[2].mxu0 %v1012_v12  ;;  %v510_v12 = vld [vmem:[%s1260_s3 + $0x68] sm:$0xff] }
 0x1d8   :  { %844 = vmatprep.mubr.msk.f32.mxu0 %vm1071_vm0, %v1070_v0  ;;  %956 = vmatpush3.bf16.msra.mxu0 %v955_v25  ;;  %v997_v13 = vpack.c.bf16 %v510_v12, %v509_v11 }
 0x1d9   :  { %957 = vmatprep.subr.bf16.mxu0 %v1072_v1 }
 0x1dc   :  { %959 = vmatpush3.bf16.msra.mxu0 %v958_v27 }
 0x1dd   :  { %960 = vmatprep.subr.bf16.mxu0 %v1072_v1 }
 0x1e0   :  { %962 = vmatpush3.bf16.msra.mxu0 %v961_v30 }
 0x1e1   :  { %963 = vmatprep.subr.bf16.mxu0 %v1072_v1 }
 0x1e4   :  { %965 = vmatpush3.bf16.msra.mxu0 %v964_v33 }
 0x1e5   :  { %966 = vmatprep.subr.bf16.mxu0 %v1072_v1 }
 0x1e8   :  { %968 = vmatpush3.bf16.msra.mxu0 %v967_v36 }
 0x1e9   :  { %969 = vmatprep.subr.bf16.mxu0 %v1072_v1 }
 0x1ec   :  { %971 = vmatpush3.bf16.msra.mxu0 %v970_v44 }
 0x1ed   :  { %972 = vmatprep.subr.bf16.mxu0 %v1072_v1 }
 0x1f0   :  { %974 = vmatpush3.bf16.msra.mxu0 %v973_v47 }
 0x1f1   :  { %975 = vmatprep.subr.bf16.mxu0 %v1072_v1 }
 0x1f4   :  { %977 = vmatpush3.bf16.msra.mxu0 %v976_v50 }
 0x2aa   :  { %v300_v38 = vpop.f32.mrb[2].mxu0 }
 0x2ab   :  { %v301_v39 = vadd.f32 %v609_v37, %v300_v38  ;;  %v776_v40 = vpop.f32.mrb[3].mxu0 }
 0x2ad   :  { %1013 = vtanh.f32 %v301_v39 }
 0x2b7   :  { %v1014_v41 = vpop.eup %1013 }
 0x2b8   :  { %810 = vmatmul.mubr.f32.vlgmr.msra.gmra.mrb[2].mxu1 %v1014_v41 }
 0x2b9   :  { %879 = vmatprep.mubr.msk.f32.mxu1 %vm1071_vm0, %v1070_v0  ;;  %v497_v0 = vld [vmem:[%s1260_s3] sm:$0xff]  ;;  %s1073_s3 = smov [#allocation5]  }
 0x2ba   :  { %v979_v53 = vpack.c.bf16 %v498_v51, %v497_v0  ;;  %s597_s27 = sshll.u32 %s1073_s3, 4  ;;  %s598_s27 = int_to_ptr.vmem [resolvable:$true] %s597_s27 }
 0x2bb   :  { %s1041_s28 = scalar_lea.vmem %s598_s27, 128  ;;  %p1046_p9 = scmp.lt.s32.totalorder %s598_s27, %s598_s27 }
 0x2bc   :  { %980 = vmatpush3.bf16.msra.mxu1 %v979_v53  ;;  %p1042_p8 = scmp.ne.s32.totalorder %s598_s27, %s1041_s28  ;;  %p1047_p10 = scmp.lt.s32.totalorder %s1041_s28, %s1041_s28 }
 0x2bd   :  { %981 = vmatprep.subr.bf16.mxu1 %v1072_v1 }
 0x2be   :  { %p1048_p11 = por %p1047_p10, %p1046_p9 }
 0x2c0   :  { %983 = vmatpush3.bf16.msra.mxu1 %v982_v55  ;;  %p1049_p12 = pnand %p1048_p11, %p1042_p8 }
 0x2c1   :  { %984 = vmatprep.subr.bf16.mxu1 %v1072_v1 }
 0x2c4   :  { %986 = vmatpush3.bf16.msra.mxu1 %v985_v58 }
 0x2c5   :  { %987 = vmatprep.subr.bf16.mxu1 %v1072_v1 }
 0x2c8   :  { %989 = vmatpush3.bf16.msra.mxu1 %v988_v61 }
 0x2c9   :  { %990 = vmatprep.subr.bf16.mxu1 %v1072_v1 }
 0x2cc   :  { %992 = vmatpush3.bf16.msra.mxu1 %v991_v2 }
 0x2cd   :  { %993 = vmatprep.subr.bf16.mxu1 %v1072_v1 }
 0x2d0   :  { %995 = vmatpush3.bf16.msra.mxu1 %v994_v10 }
 0x2d1   :  { %996 = vmatprep.subr.bf16.mxu1 %v1072_v1 }
 0x2d4   :  { %998 = vmatpush3.bf16.msra.mxu1 %v997_v13 }
 0x2d5   :  { %999 = vmatprep.subr.bf16.mxu1 %v1072_v1 }
 0x2d8   :  { %1001 = vmatpush3.bf16.msra.mxu1 %v1000_v16 }
 0x38b   :  { %v396_v4 = vpop.f32.mrb[2].mxu1 }
 0x38c   :  { %v397_v5 = vadd.f32 %v611_v3, %v396_v4  ;;  %v811_v6 = vpop.f32.mrb[3].mxu1 }
 0x38e   :  { %1015 = vtanh.f32 %v397_v5 }
 0x398   :  { %v1016_v7 = vpop.eup %1015 }
 0x399   :  { %845 = vmatmul.mubr.f32.vlgmr.msra.gmra.mrb[4].mxu0 %v1016_v7 }
 0x46c   :  { %v492_v18 = vpop.f32.mrb[4].mxu0 }
 0x46d   :  { %v493_v19 = vadd.f32 %v613_v17, %v492_v18  ;;  %v846_v20 = vpop.f32.mrb[5].mxu0 }
 0x46f   :  { %1017 = vtanh.f32 %v493_v19 }
 0x479   :  { %v1018_v21 = vpop.eup %1017 }
 0x47a   :  { %880 = vmatmul.mubr.f32.vlgmr.msra.gmra.mrb[4].mxu1 %v1018_v21 }
 0x54d   :  { %v586_v23 = vpop.f32.mrb[4].mxu1 }
 0x54e   :  { %v587_v24 = vadd.f32 %v614_v22, %v586_v23  ;;  %v881_v1 = vpop.f32.mrb[5].mxu1 }
 0x550   :  { %590 = vst.msk [vmem:[#allocation5] sm:$0xff] %vm40_vm1, %v587_v24 }
 0x551   :  { %1052 = shalt.err (!%p1049_p12)
}
 0x552   :  { %s1053_s30 = scalar_lea.hbm %s1263_s6, 128 }
 0x553   :  { %p1054_p13 = scmp.ne.s32.totalorder %s1263_s6, %s1053_s30  ;;  %p1057_p0 = scmp.lt.u32.totalorder %s1053_s30, %s1263_s6 }
 0x555   :  { %p1059_p1 = pnand %p1057_p0, %p1054_p13 }
 0x557   :  { %1062 = shalt.err (!%p1059_p1)
}
 0x558   :  { %600 = dma.vmem_to_hbm [thread:$0]  %s598_s27, 128, %s1263_s6, [#allocation4]  }
 0x559   :  { %1065 = dma.done.wait [#allocation4], 128  }
 0x55a   :  { %1066 = vsyncadd [#allocation4], 4294967168 }
 0x55b   :  { %604 = vsyncpa [#allocation3], 1 }
 0x55c   :  { %605 = vsyncpa [#allocation4], 1 }

</bundles_post_ra>
